<compile_context>
chip_gen: v5e
topology: v5e:2x2
jax: 0.10.0
libtpu: 0.0.40
codegen_flags: <defaults>
</compile_context>

<pallas_src>
import numpy as np
import jax
import jax.numpy as jnp
from jax.experimental import pallas as pl
from jax.experimental.pallas import tpu as pltpu


# --------------------------------------------------------------------------
# Parameter setup (matches torch __init__ exactly)
# --------------------------------------------------------------------------
def make_positional_encoding(dim: int, max_len: int = 500) -> jnp.ndarray:
    position = np.arange(0, max_len, dtype=np.float32)[:, None]              # (max_len, 1)
    div_term = np.exp(np.arange(0, dim, 2, dtype=np.float32)
                      * -(np.log(10000.0) / dim))                            # (dim//2,)
    pe = np.zeros((max_len, dim), dtype=np.float32)
    pe[:, 0::2] = np.sin(position * div_term)
    pe[:, 1::2] = np.cos(position * div_term)
    return jnp.asarray(pe)                                                    # (max_len, dim)


# --------------------------------------------------------------------------
# Kernel: lane-dense broadcast-add over a (bt, tile_sd) tile
# --------------------------------------------------------------------------
def _add_pe_kernel(x_ref, pe_ref, o_ref):
    # x_ref: (bt, tile_sd); pe_ref: (1, tile_sd) -> broadcast over the batch chunk.
    o_ref[...] = x_ref[...] + pe_ref[...]


def _pick_tiles(B: int, SD: int, itemsize: int):
    """Pick (batch_tile, lane_tile) for the 2-D grid.

    Budget: ~2 MiB per x tile (≈85% of HBM roofline for streaming adds, fits
    the v5e 16 MiB scoped-VMEM default with double-buffered in+out+pe).  The
    lane tile is a multiple of 128 (or the full S*D), capped so `sub` rows fit
    the budget — this also bounds the sublane-padded (1, tile_sd) pe block.
    Guarantees >= 4 grid steps (>= 2 per v7x TensorCore) when total bytes
    allow, without shrinking tiles below ~256 KiB.
    """
    TARGET = 2 << 20            # per-x-tile byte budget
    MIN_TILE = 256 << 10        # never shrink below this just to add steps
    MIN_STEPS = 4               # >= 2 pipelined steps per v7x core
    sub = max(8, 32 // itemsize)            # sublane packing: 8 f32 / 16 bf16 / 32 int8

    # Lane (S*D) axis: 128-multiple chunks; full dim when it already fits.
    lane_budget = max(128, (TARGET // (sub * itemsize)) // 128 * 128)
    tile_sd = SD if SD <= lane_budget else lane_budget

    # Batch (sublane) axis: fill the remaining budget, in packing multiples.
    bt = min(B, max(1, TARGET // max(1, tile_sd * itemsize)))
    if bt < B:
        bt = min(B, max(sub, (bt // sub) * sub))

    def nsteps(b, t):
        return pl.cdiv(B, b) * pl.cdiv(SD, t)

    # Ensure enough steps for DMA pipelining / both v7x cores when bytes allow.
    while (nsteps(bt, tile_sd) < MIN_STEPS
           and bt * tile_sd * itemsize >= 2 * MIN_TILE):
        if bt >= 2 * sub:
            bt = max(sub, ((bt // 2) // sub) * sub)
        elif tile_sd >= 256:
            tile_sd = max(128, ((tile_sd // 2) // 128) * 128)
        else:
            break

    return bt, tile_sd


def positional_encoding_forward(x: jnp.ndarray, pe_flat: jnp.ndarray,
                                *, donate_x: bool = False) -> jnp.ndarray:
    """
    x:       (B, S, D)
    pe_flat: (1, S*D) positional table already sliced to S, cast to x.dtype,
             and flattened lane-dense (see PositionalEncoding._pe_flat).
    donate_x: set True only if the caller donates x (jit donate_argnums) and
             never reads it again; then the result is written in place.
             Aliasing a non-donated x would force XLA to insert a defensive
             copy (a full extra HBM pass), so the default is off.
    returns x + pe[:S]  broadcast over batch (same as the PyTorch forward).
    """
    B, S, D = x.shape
    SD = S * D

    # Lane-dense flatten: last dim becomes S*D so stores are full-width vst.
    x2 = x.reshape(B, SD)

    bt, tile_sd = _pick_tiles(B, SD, x.dtype.itemsize)
    grid = (pl.cdiv(B, bt), pl.cdiv(SD, tile_sd))

    out2 = pl.pallas_call(
        _add_pe_kernel,
        out_shape=jax.ShapeDtypeStruct((B, SD), x.dtype),
        grid=grid,
        in_specs=[
            pl.BlockSpec((bt, tile_sd), lambda i, j: (i, j)),   # x chunk
            pl.BlockSpec((1, tile_sd), lambda i, j: (0, j)),    # pe lane chunk
        ],
        out_specs=pl.BlockSpec((bt, tile_sd), lambda i, j: (i, j)),
        compiler_params=pltpu.CompilerParams(
            dimension_semantics=("parallel", "parallel"),
        ),
        input_output_aliases={0: 0} if donate_x else {},
    )(x2, pe_flat)

    return out2.reshape(B, S, D)


class PositionalEncoding:
    """JAX/Pallas mirror of the PyTorch module; caches the flattened pe slice."""

    def __init__(self, dim: int, max_len: int = 500):
        self.dim = dim
        self.max_len = max_len
        self.pe = make_positional_encoding(dim, max_len)      # (max_len, dim) f32
        self._flat_cache = {}

    def _pe_flat(self, S: int, dtype) -> jnp.ndarray:
        key = (S, jnp.dtype(dtype).name)
        if key not in self._flat_cache:
            # NOTE: casting pe to x.dtype (bf16/fp16) differs slightly from the
            # PyTorch module, which keeps pe in fp32 and promotes the add; for
            # fp32 inputs (the shipped case) it is bit-identical.
            self._flat_cache[key] = (
                self.pe[:S, :].astype(dtype).reshape(1, S * self.dim))
        return self._flat_cache[key]

    def __call__(self, x: jnp.ndarray, *, donate_x: bool = False) -> jnp.ndarray:
        B, S, D = x.shape
        assert D == self.dim, f"dim mismatch: {D} vs {self.dim}"
        assert S <= self.max_len, f"sequence length {S} exceeds max_len {self.max_len}"
        return positional_encoding_forward(x, self._pe_flat(S, x.dtype),
                                           donate_x=donate_x)


if __name__ == "__main__":
    B, S, D = 2, 8, 32
    MAX_LEN = 500

    key = jax.random.PRNGKey(0)
    x = jax.random.normal(key, (B, S, D), dtype=jnp.float32)

    module = PositionalEncoding(D, MAX_LEN)
    out = module(x)
    out = jax.block_until_ready(out)

    # Reference check in plain JAX (same math as the PyTorch forward).
    ref = x + module.pe[None, :S, :]
    np.testing.assert_allclose(np.asarray(out), np.asarray(ref), rtol=1e-6, atol=1e-6)

    print("KERNEL_OK")
</pallas_src>

<mosaic_0001>
module attributes {stable_mosaic.version = 11 : i64} {
  func.func @_add_pe_kernel(%arg0: i32, %arg1: i32, %arg2: memref<2x256xf32, #tpu.memory_space<vmem>>, %arg3: memref<1x256xf32, #tpu.memory_space<vmem>>, %arg4: memref<2x256xf32, #tpu.memory_space<vmem>>) attributes {dimension_semantics = [#tpu.dimension_semantics<parallel>, #tpu.dimension_semantics<parallel>], iteration_bounds = array<i64: 1, 1>, scalar_prefetch = 0 : i64, scratch_operands = 0 : i64, tpu.core_type = #tpu.core_type<tc>, window_params = [{transform_indices = @transform_0, window_bounds = array<i64: 2, 256>}, {transform_indices = @transform_1, window_bounds = array<i64: 1, 256>}, {transform_indices = @transform_2, window_bounds = array<i64: 2, 256>}]} {
    %c0 = arith.constant 0 : index
    %c0_0 = arith.constant 0 : index
    %0 = vector.load %arg2[%c0, %c0_0] : memref<2x256xf32, #tpu.memory_space<vmem>>, vector<2x256xf32>
    %c0_1 = arith.constant 0 : index
    %c0_2 = arith.constant 0 : index
    %1 = vector.load %arg3[%c0_1, %c0_2] : memref<1x256xf32, #tpu.memory_space<vmem>>, vector<1x256xf32>
    %2 = vector.broadcast %1 : vector<1x256xf32> to vector<2x256xf32>
    %3 = arith.addf %0, %2 : vector<2x256xf32>
    %c0_3 = arith.constant 0 : index
    %c0_4 = arith.constant 0 : index
    %4 = vector.load %arg4[%c0_3, %c0_4] : memref<2x256xf32, #tpu.memory_space<vmem>>, vector<2x256xf32>
    tpu.vector_store %arg4[%c0_3, %c0_4], %3 {strides = array<i32>} : memref<2x256xf32, #tpu.memory_space<vmem>>, vector<2x256xf32>,
    return
  }
  func.func @transform_0(%arg0: i32, %arg1: i32) -> (i32, i32) {
    %c0_i32 = arith.constant 0 : i32
    return %arg0, %arg1 : i32, i32
  }
  func.func @transform_1(%arg0: i32, %arg1: i32) -> (i32, i32) {
    %c0_i32 = arith.constant 0 : i32
    %c0_i32_0 = arith.constant 0 : i32
    return %c0_i32, %arg1 : i32, i32
  }
  func.func @transform_2(%arg0: i32, %arg1: i32) -> (i32, i32) {
    %c0_i32 = arith.constant 0 : i32
    return %arg0, %arg1 : i32, i32
  }
}

</mosaic_0001>

<bundles_post_ra>
// kernel: tpu_custom_call.1
= control target key start
LH: loop header
LB: loop body
LE: loop exit
PB: predicated region body
PF: predicated region fallthrough
CT: control target
= control target key end

     0   :  { %7 = vsyncpa [#allocation3], 0  ;;  %s177_s0 = inlined_call_operand.hbm [shape: f32[2,256], index: 0, kind: input, shape index: {}]   ;;  %s178_s1 = inlined_call_operand.hbm [shape: f32[1,256], index: 1, kind: input, shape index: {}]   ;;  %s179_s2 = inlined_call_operand.hbm [shape: f32[2,256], index: 2, kind: output, shape index: {}]  }
   0x1   :  { %8 = vsyncpa [#allocation6], 0 }
   0x2   :  { %9 = vsyncpa [#allocation4], 0  ;;  %s15_s11 = sshll.u32 %s177_s0, 4  ;;  %s150_s12 = smov [#allocation2]   ;;  %s16_s11 = int_to_ptr.hbm [resolvable:$true] %s15_s11 }
   0x3   :  { %s17_s13 = sshll.u32 %s150_s12, 4  ;;  %s26_s16 = sshll.u32 %s178_s1, 4  ;;  %s18_s13 = int_to_ptr.vmem [resolvable:$true] %s17_s13  ;;  %s27_s16 = int_to_ptr.hbm [resolvable:$true] %s26_s16 }
   0x4   :  { %20 = dma.hbm_to_vmem [thread:$0]  %s16_s11, 64, %s18_s13, [#allocation3]  }
   0x5   :  { %s151_s17 = smov [#allocation5]  }
   0x6   :  { %s28_s18 = sshll.u32 %s151_s17, 4  ;;  %s29_s18 = int_to_ptr.vmem [resolvable:$true] %s28_s18 }
   0x7   :  { %31 = dma.hbm_to_vmem [thread:$0]  %s27_s16, 32, %s29_s18, [#allocation6]  }
   0x8   :  { %144 = dma.done.wait [#allocation3], 64  }
   0x9   :  { %145 = vsyncadd [#allocation3], 4294967232 }
   0xa   :  { %146 = dma.done.wait [#allocation6], 32  }
   0xb   :  { %147 = vsyncadd [#allocation6], 4294967264  ;;  %v41_v0 = vld [vmem:[#allocation5] sm:$0x3]  ;;  %vm46_vm0 = vcmask 1041408   ;;  %s152_s0 = smov [#allocation7]  }
   0xc   :  { %v43_v1 = vperm.slane %v41_v0, 0  ;;  %v44_v2 = vperm.slane %v41_v0, 1  ;;  %v40_v3 = vld [vmem:[#allocation2] sm:$0xf]  ;;  %s56_s19 = sshll.u32 %s152_s0, 4  ;;  %s58_s21 = sshll.u32 %s179_s2, 4  ;;  %s57_s19 = int_to_ptr.vmem [resolvable:$true] %s56_s19  ;;  %s59_s21 = int_to_ptr.hbm [resolvable:$true] %s58_s21 }
   0xe   :  { %v45_v4 = vrot.slane %v44_v2, 6 }
  0x10   :  { %v47_v5 = vsel %vm46_vm0, %v43_v1, %v45_v4 }
  0x11   :  { %v49_v6 = vadd.f32 %v47_v5, %v40_v3 }
  0x13   :  { %50 = vst [vmem:[#allocation7] sm:$0xf] %v49_v6 }
  0x14   :  { %61 = dma.vmem_to_hbm [thread:$0]  %s57_s19, 64, %s59_s21, [#allocation4]  }
  0x15   :  { %148 = dma.done.wait [#allocation4], 64  }
  0x16   :  { %149 = vsyncadd [#allocation4], 4294967232 }
  0x17   :  { %66 = vsyncpa [#allocation3], 1 }
  0x18   :  { %67 = vsyncpa [#allocation6], 1 }
  0x19   :  { %68 = vsyncpa [#allocation4], 1 }

</bundles_post_ra>
